<compile_context>
chip_gen: v5e
topology: v5e:2x2
jax: 0.10.0
libtpu: 0.0.40
codegen_flags: <defaults>
</compile_context>

<pallas_src>
import jax
import jax.numpy as jnp
from jax.experimental import pallas as pl
from jax.experimental.pallas import tpu as pltpu

IN_FEATURES = 82
OUT_FEATURES = 1


def linear_kernel(x_ref, w_ref, b_ref, o_ref):
    # x_ref: [TILE_B, 82] (VMEM), w_ref: [1, 82] (VMEM, resident),
    # b_ref: [1] (SMEM scalar), o_ref: [TILE_B, 1] (VMEM).
    prod = x_ref[...] * w_ref[...]                      # VPU, broadcast over rows
    y = jnp.sum(prod, axis=1, keepdims=True)            # XLU lane reduce -> [TILE_B, 1]
    o_ref[...] = (y + b_ref[0]).astype(o_ref.dtype)     # scalar bias from SMEM


def pretrain_model3_forward(x, w, b, *, tile_b=8192):
    """x: [B, 82] f32, w: [82, 1] f32, b: [1] f32 -> [B, 1] f32."""
    B, F = x.shape
    assert F == IN_FEATURES
    w_row = w.reshape(1, IN_FEATURES)   # [1, 82] row vector for the VPU path

    # Clamp / align the batch tile. If the tile covers the whole batch the
    # (8, 128) constraint is satisfied by "block == full dim"; otherwise keep
    # the sublane dim a multiple of 8.
    tile_b = min(tile_b, B)
    if tile_b < B:
        tile_b = max(8, (tile_b // 8) * 8)
    grid = (pl.cdiv(B, tile_b),)

    # Double-buffered x + out blocks, lane-padded to 128, f32; + headroom.
    vmem_limit = max(2 * 2 * tile_b * 128 * 4 + (4 << 20), 16 << 20)

    return pl.pallas_call(
        linear_kernel,
        out_shape=jax.ShapeDtypeStruct((B, OUT_FEATURES), x.dtype),
        grid_spec=pltpu.PrefetchScalarGridSpec(
            num_scalar_prefetch=0,
            grid=grid,
            in_specs=[
                # Streamed batch tiles of x.
                pl.BlockSpec((tile_b, IN_FEATURES), lambda i: (i, 0)),
                # Weight row stays resident across the whole grid.
                pl.BlockSpec((1, IN_FEATURES), lambda i: (0, 0)),
                # Bias scalar lives in SMEM.
                pl.BlockSpec(memory_space=pltpu.MemorySpace.SMEM),
            ],
            out_specs=pl.BlockSpec((tile_b, OUT_FEATURES), lambda i: (i, 0)),
        ),
        compiler_params=pltpu.CompilerParams(
            dimension_semantics=("parallel",),   # shard batch grid across TCs (v7x)
            vmem_limit_bytes=vmem_limit,
        ),
    )(x, w_row, b)


def init_params(key):
    """Deterministic init mirroring nn.Linear default (uniform +-1/sqrt(fan_in))."""
    k_w, k_b = jax.random.split(key)
    bound = 1.0 / jnp.sqrt(jnp.float32(IN_FEATURES))
    # PyTorch weight is [out, in]; we keep the transposed [in, out] layout.
    w = jax.random.uniform(
        k_w, (IN_FEATURES, OUT_FEATURES), jnp.float32, -bound, bound
    )
    b = jax.random.uniform(k_b, (OUT_FEATURES,), jnp.float32, -bound, bound)
    return w, b


if __name__ == "__main__":
    key = jax.random.PRNGKey(0)
    k_x, k_p = jax.random.split(key)

    # Small batch, but large enough (and with a small tile) to exercise the
    # multi-step pipelined grid: grid = (512 / 128,) = (4,).
    B = 512
    x = jax.random.normal(k_x, (B, IN_FEATURES), jnp.float32)
    w, b = init_params(k_p)

    y = pretrain_model3_forward(x, w, b, tile_b=128)
    y = jax.block_until_ready(y)

    # Reference check against plain JAX (same math as torch Linear).
    y_ref = x @ w + b
    assert y.shape == (B, OUT_FEATURES)
    assert jnp.allclose(y, y_ref, atol=1e-4, rtol=1e-5), float(
        jnp.max(jnp.abs(y - y_ref))
    )

    print("KERNEL_OK")
</pallas_src>

<mosaic_0001>
module attributes {stable_mosaic.version = 11 : i64} {
  func.func @linear_kernel(%arg0: i32, %arg1: memref<128x82xf32, #tpu.memory_space<vmem>>, %arg2: memref<1x82xf32, #tpu.memory_space<vmem>>, %arg3: memref<1xf32, #tpu.memory_space<smem>>, %arg4: memref<128x1xf32, #tpu.memory_space<vmem>>) attributes {dimension_semantics = [#tpu.dimension_semantics<parallel>], iteration_bounds = array<i64: 4>, scalar_prefetch = 0 : i64, scratch_operands = 0 : i64, tpu.core_type = #tpu.core_type<tc>, window_params = [{transform_indices = @transform_0, window_bounds = array<i64: 128, 82>}, {pipeline_mode = #tpu.pipeline_mode<synchronous>, transform_indices = @transform_1, window_bounds = array<i64: 1, 82>}, {transform_indices = @transform_2, window_bounds = array<i64: 1>}, {transform_indices = @transform_3, window_bounds = array<i64: 128, 1>}]} {
    %c0 = arith.constant 0 : index
    %c0_0 = arith.constant 0 : index
    %0 = vector.load %arg1[%c0, %c0_0] : memref<128x82xf32, #tpu.memory_space<vmem>>, vector<128x82xf32>
    %c0_1 = arith.constant 0 : index
    %c0_2 = arith.constant 0 : index
    %1 = vector.load %arg2[%c0_1, %c0_2] : memref<1x82xf32, #tpu.memory_space<vmem>>, vector<1x82xf32>
    %2 = vector.broadcast %1 : vector<1x82xf32> to vector<128x82xf32>
    %3 = arith.mulf %0, %2 : vector<128x82xf32>
    %cst = arith.constant dense<0.000000e+00> : vector<128xf32>
    %4 = vector.multi_reduction <add>, %3, %cst [1] : vector<128x82xf32> to vector<128xf32>
    %5 = vector.shape_cast %4 : vector<128xf32> to vector<128x1xf32>
    %c0_3 = arith.constant 0 : index
    %6 = memref.load %arg3[%c0_3] : memref<1xf32, #tpu.memory_space<smem>>
    %7 = vector.broadcast %6 : f32 to vector<128x1xf32>
    %8 = arith.addf %5, %7 : vector<128x1xf32>
    %c0_4 = arith.constant 0 : index
    %c0_5 = arith.constant 0 : index
    %9 = vector.load %arg4[%c0_4, %c0_5] : memref<128x1xf32, #tpu.memory_space<vmem>>, vector<128x1xf32>
    tpu.vector_store %arg4[%c0_4, %c0_5], %8 {strides = array<i32>} : memref<128x1xf32, #tpu.memory_space<vmem>>, vector<128x1xf32>,
    return
  }
  func.func @transform_0(%arg0: i32) -> (i32, i32) {
    %c0_i32 = arith.constant 0 : i32
    %c0_i32_0 = arith.constant 0 : i32
    return %arg0, %c0_i32 : i32, i32
  }
  func.func @transform_1(%arg0: i32) -> (i32, i32) {
    %c0_i32 = arith.constant 0 : i32
    %c0_i32_0 = arith.constant 0 : i32
    %c0_i32_1 = arith.constant 0 : i32
    return %c0_i32, %c0_i32_0 : i32, i32
  }
  func.func @transform_2(%arg0: i32) -> i32 {
    %c0_i32 = arith.constant 0 : i32
    %c0_i32_0 = arith.constant 0 : i32
    return %c0_i32 : i32
  }
  func.func @transform_3(%arg0: i32) -> (i32, i32) {
    %c0_i32 = arith.constant 0 : i32
    %c0_i32_0 = arith.constant 0 : i32
    return %arg0, %c0_i32 : i32, i32
  }
}

</mosaic_0001>

<bundles_post_ra>
// kernel: tpu_custom_call.1
= control target key start
LH: loop header
LB: loop body
LE: loop exit
PB: predicated region body
PF: predicated region fallthrough
CT: control target
= control target key end

     0   :  { %s402_s14 = smov 0   ;;  %s515_s0 = inlined_call_operand.vmem [shape: f32[512,82], index: 0, kind: input, shape index: {}]   ;;  %s516_s1 = inlined_call_operand.vmem [shape: f32[1,82], index: 1, kind: input, shape index: {}]   ;;  %s517_s2 = inlined_call_operand.<no memory space> [shape: f32[1], index: 2, kind: input, shape index: {}]   ;;  %s518_s3 = inlined_call_operand.vmem [shape: f32[512,1], index: 3, kind: output, shape index: {}]  }
   0x1   :  { %8 = sst [smem:[#allocation2]] %s517_s2 }
   0x2 LB: > { %s351_s15 = sadd.s32 4294967295, %s377_s14   ;;  %p355_p0 = scmp.ge.s32.totalorder %s377_s14, 1  ;;  %s377_s14 = sphi %s402_s14, %s14_s14  }
   0x3   : > { %p139_p1 = scmp.lt.s32.totalorder %s377_s14, 5 }
   0x5   : > { %p140_p2 = pnand %p355_p0, %p139_p1 }
   0x6   : > { %s356_s16 = sshll.u32 (!%p140_p2), %s351_s15, 4  ;;  %s260_s22 = sld [smem:[#allocation2]] (!%p140_p2) }
   0x7   : > { %143 = sbr.rel (%p140_p2) target bundleno = 178 (0xb2), region = 32  ;;  %p164_p3 = scmp.lt.s32.totalorder (!%p140_p2), %s356_s16, 63 }
   0xc   : > { %s520_s16 = smov (!%p164_p3, %s356_s16), 63  ;;  %v415_v0 = vld [vmem:[%s516_s1] ss:$0 sm:$0xff]  ;;  %vm211_vm0 = vcmask 670720   ;;  %v261_v49 = vstv %s260_s22  ;;  %vm278_vm1 = vcmask 7168  }
   0xd   : > { %s357_s18 = sshll.u32 %s520_s16, 3 }
   0xe   : > { %s423_s21 = scalar_lea.vmem %s515_s0, %s357_s18  ;;  %s478_s25 = scalar_lea.vmem %s518_s3, %s357_s18 }
   0xf   : > { %v175_v1 = vld [vmem:[%s423_s21] sm:$0xff]  ;;  %v177_v3 = vld [vmem:[%s423_s21 + $0x10] sm:$0xff]  ;;  %v176_v7 = vld [vmem:[%s423_s21 + $0x8] sm:$0xff] }
  0x10   : > { %v179_v2 = vld [vmem:[%s423_s21 + $0x20] sm:$0xff]  ;;  %v195_v4 = vmul.f32 %v415_v0, %v175_v1  ;;  %v197_v6 = vmul.f32 %v415_v0, %v177_v3  ;;  %v180_v8 = vld [vmem:[%s423_s21 + $0x28] sm:$0xff]  ;;  %v178_v12 = vld [vmem:[%s423_s21 + $0x18] sm:$0xff]  ;;  %v196_v13 = vmul.f32 %v415_v0, %v176_v7 }
  0x11   : > { %v199_v5 = vmul.f32 %v415_v0, %v179_v2  ;;  %v200_v14 = vmul.f32 %v415_v0, %v180_v8  ;;  %v198_v15 = vmul.f32 %v415_v0, %v178_v12  ;;  %v181_v19 = vld [vmem:[%s423_s21 + $0x30] sm:$0xff]  ;;  %v183_v20 = vld [vmem:[%s423_s21 + $0x40] sm:$0xff]  ;;  %v182_v21 = vld [vmem:[%s423_s21 + $0x38] sm:$0xff] }
  0x12   : > { %v212_v9 = vsel %vm211_vm0, %v195_v4, 0.0  ;;  %v218_v11 = vsel %vm211_vm0, %v197_v6, 0.0  ;;  %v215_v16 = vsel %vm211_vm0, %v196_v13, 0.0  ;;  %v201_v22 = vmul.f32 %v415_v0, %v181_v19  ;;  %v184_v28 = vld [vmem:[%s423_s21 + $0x48] sm:$0xff]  ;;  %v186_v29 = vld [vmem:[%s423_s21 + $0x58] sm:$0xff]  ;;  %v185_v30 = vld [vmem:[%s423_s21 + $0x50] sm:$0xff] }
  0x13   : > { %v224_v10 = vsel %vm211_vm0, %v199_v5, 0.0  ;;  %213 = vadd.xlane.f32.xlu0 %v212_v9  ;;  %219 = vadd.xlane.f32.xlu1 %v218_v11  ;;  %v227_v17 = vsel %vm211_vm0, %v200_v14, 0.0  ;;  %v221_v18 = vsel %vm211_vm0, %v198_v15, 0.0  ;;  %v203_v23 = vmul.f32 %v415_v0, %v183_v20  ;;  %v187_v37 = vld [vmem:[%s423_s21 + $0x60] sm:$0xff]  ;;  %v189_v38 = vld [vmem:[%s423_s21 + $0x70] sm:$0xff]  ;;  %v188_v39 = vld [vmem:[%s423_s21 + $0x68] sm:$0xff] }
  0x14   : > { %225 = vadd.xlane.f32.xlu2 %v224_v10  ;;  %v202_v24 = vmul.f32 %v415_v0, %v182_v21  ;;  %v230_v25 = vsel %vm211_vm0, %v201_v22, 0.0  ;;  %v204_v31 = vmul.f32 %v415_v0, %v184_v28  ;;  %v206_v32 = vmul.f32 %v415_v0, %v186_v29  ;;  %v190_v46 = vld [vmem:[%s423_s21 + $0x78] sm:$0xff] }
  0x15   : > { %v236_v26 = vsel %vm211_vm0, %v203_v23, 0.0  ;;  %v205_v33 = vmul.f32 %v415_v0, %v185_v30  ;;  %v207_v40 = vmul.f32 %v415_v0, %v187_v37  ;;  %v209_v41 = vmul.f32 %v415_v0, %v189_v38 }
  0x16   : > { %v233_v27 = vsel %vm211_vm0, %v202_v24, 0.0  ;;  %v239_v34 = vsel %vm211_vm0, %v204_v31, 0.0  ;;  %v245_v35 = vsel %vm211_vm0, %v206_v32, 0.0  ;;  %v208_v42 = vmul.f32 %v415_v0, %v188_v39 }
  0x17   : > { %v242_v36 = vsel %vm211_vm0, %v205_v33, 0.0  ;;  %v248_v43 = vsel %vm211_vm0, %v207_v40, 0.0  ;;  %v254_v44 = vsel %vm211_vm0, %v209_v41, 0.0  ;;  %v210_v47 = vmul.f32 %v415_v0, %v190_v46 }
  0x18   : > { %v251_v45 = vsel %vm211_vm0, %v208_v42, 0.0 }
  0x19   : > { %v257_v48 = vsel %vm211_vm0, %v210_v47, 0.0 }
  0x1b   : > { %216 = vadd.xlane.f32.xlu0 %v215_v16  ;;  %222 = vadd.xlane.f32.xlu1 %v221_v18 }
  0x1c   : > { %228 = vadd.xlane.f32.xlu2 %v227_v17 }
  0x23   : > { %231 = vadd.xlane.f32.xlu0 %v230_v25  ;;  %234 = vadd.xlane.f32.xlu1 %v233_v27 }
  0x24   : > { %237 = vadd.xlane.f32.xlu2 %v236_v26 }
  0x2b   : > { %240 = vadd.xlane.f32.xlu0 %v239_v34  ;;  %243 = vadd.xlane.f32.xlu1 %v242_v36 }
  0x2c   : > { %246 = vadd.xlane.f32.xlu2 %v245_v35 }
  0x33   : > { %249 = vadd.xlane.f32.xlu0 %v248_v43  ;;  %252 = vadd.xlane.f32.xlu1 %v251_v45 }
  0x34   : > { %255 = vadd.xlane.f32.xlu2 %v254_v44 }
  0x3b   : > { %258 = vadd.xlane.f32.xlu0 %v257_v48 }
  0x86   : > { %v214_v50 = vpop.xlane.xlu0 %213  ;;  %v220_v54 = vpop.xlane.xlu1 %219 }
  0x87   : > { %v226_v51 = vpop.xlane.xlu2 %225  ;;  %v262_v52 = vadd.f32 %v261_v49, %v214_v50  ;;  %v264_v55 = vadd.f32 %v261_v49, %v220_v54 }
  0x88   : > { %v266_v53 = vadd.f32 %v261_v49, %v226_v51 }
  0x89   : > { %279 = vst.msk [vmem:[%s478_s25] sm:$0xff] %vm278_vm1, %v262_v52 }
  0x8a   : > { %283 = vst.msk [vmem:[%s478_s25 + $0x20] sm:$0xff] %vm278_vm1, %v266_v53 }
  0x8b   : > { %281 = vst.msk [vmem:[%s478_s25 + $0x10] sm:$0xff] %vm278_vm1, %v264_v55 }
  0x8e   : > { %v217_v56 = vpop.xlane.xlu0 %216  ;;  %v223_v60 = vpop.xlane.xlu1 %222 }
  0x8f   : > { %v229_v57 = vpop.xlane.xlu2 %228  ;;  %v263_v58 = vadd.f32 %v261_v49, %v217_v56  ;;  %v265_v61 = vadd.f32 %v261_v49, %v223_v60 }
  0x90   : > { %v267_v59 = vadd.f32 %v261_v49, %v229_v57 }
  0x91   : > { %280 = vst.msk [vmem:[%s478_s25 + $0x8] sm:$0xff] %vm278_vm1, %v263_v58 }
  0x92   : > { %284 = vst.msk [vmem:[%s478_s25 + $0x28] sm:$0xff] %vm278_vm1, %v267_v59 }
  0x93   : > { %282 = vst.msk [vmem:[%s478_s25 + $0x18] sm:$0xff] %vm278_vm1, %v265_v61 }
  0x96   : > { %v232_v62 = vpop.xlane.xlu0 %231  ;;  %v235_v2 = vpop.xlane.xlu1 %234 }
  0x97   : > { %v238_v63 = vpop.xlane.xlu2 %237  ;;  %v268_v0 = vadd.f32 %v261_v49, %v232_v62  ;;  %v269_v3 = vadd.f32 %v261_v49, %v235_v2 }
  0x98   : > { %v270_v1 = vadd.f32 %v261_v49, %v238_v63 }
  0x99   : > { %285 = vst.msk [vmem:[%s478_s25 + $0x30] sm:$0xff] %vm278_vm1, %v268_v0 }
  0x9a   : > { %287 = vst.msk [vmem:[%s478_s25 + $0x40] sm:$0xff] %vm278_vm1, %v270_v1 }
  0x9b   : > { %286 = vst.msk [vmem:[%s478_s25 + $0x38] sm:$0xff] %vm278_vm1, %v269_v3 }
  0x9e   : > { %v241_v4 = vpop.xlane.xlu0 %240  ;;  %v244_v8 = vpop.xlane.xlu1 %243 }
  0x9f   : > { %v247_v5 = vpop.xlane.xlu2 %246  ;;  %v271_v6 = vadd.f32 %v261_v49, %v241_v4  ;;  %v272_v9 = vadd.f32 %v261_v49, %v244_v8 }
  0xa0   : > { %v273_v7 = vadd.f32 %v261_v49, %v247_v5 }
  0xa1   : > { %288 = vst.msk [vmem:[%s478_s25 + $0x48] sm:$0xff] %vm278_vm1, %v271_v6 }
  0xa2   : > { %290 = vst.msk [vmem:[%s478_s25 + $0x58] sm:$0xff] %vm278_vm1, %v273_v7 }
  0xa3   : > { %289 = vst.msk [vmem:[%s478_s25 + $0x50] sm:$0xff] %vm278_vm1, %v272_v9 }
  0xa6   : > { %v250_v10 = vpop.xlane.xlu0 %249  ;;  %v253_v14 = vpop.xlane.xlu1 %252 }
  0xa7   : > { %v256_v11 = vpop.xlane.xlu2 %255  ;;  %v274_v12 = vadd.f32 %v261_v49, %v250_v10  ;;  %v275_v15 = vadd.f32 %v261_v49, %v253_v14 }
  0xa8   : > { %v276_v13 = vadd.f32 %v261_v49, %v256_v11 }
  0xa9   : > { %291 = vst.msk [vmem:[%s478_s25 + $0x60] sm:$0xff] %vm278_vm1, %v274_v12 }
  0xaa   : > { %293 = vst.msk [vmem:[%s478_s25 + $0x70] sm:$0xff] %vm278_vm1, %v276_v13 }
  0xab   : > { %292 = vst.msk [vmem:[%s478_s25 + $0x68] sm:$0xff] %vm278_vm1, %v275_v15 }
  0xae   : > { %v259_v16 = vpop.xlane.xlu0 %258 }
  0xaf   : > { %v277_v17 = vadd.f32 %v261_v49, %v259_v16 }
  0xb1   : > { %294 = vst.msk [vmem:[%s478_s25 + $0x78] sm:$0xff] %vm278_vm1, %v277_v17 }
  0xb2 PF: > { %s14_s14 = sadd.s32 1, %s377_s14  }
  0xb3   : > { %p11_p4 = scmp.ge.s32.totalorder %s14_s14, 6  }
  0xb5   :  { %13 = sbr.rel (!%p11_p4) target bundleno = 2 (0x2), region = 62 }

</bundles_post_ra>
